<compile_context>
chip_gen: v7x
topology: tpu7x:2x2x1
jax: 0.10.0
libtpu: 0.0.40
codegen_flags: <defaults>
</compile_context>

<pallas_src>
import jax
import jax.numpy as jnp
from jax import lax
from jax.experimental import pallas as pl
from jax.experimental.pallas import tpu as pltpu


_SQRT_HALF = 0.7071067811865476
_MIN_ROW_TILE = 128  # below this, splitting rows across TensorCores isn't worth it


def _gelu_exact(x):
    # Exact (erf-based) GELU, matching PyTorch get_activation("gelu").
    return 0.5 * x * (1.0 + lax.erf(x * _SQRT_HALF))


def _round_up(x, m):
    return (x + m - 1) // m * m


def mlm_head_kernel(x_ref, wd_ref, bd_ref, g_ref, b_ref,
                    wdec_ref, bdec_ref, o_ref, h_scr):
    # Transform (dense -> gelu -> residual -> layernorm) is independent of the vocab
    # tile: compute it once per M-tile on the first (sequential/"arbitrary") vocab
    # step and cache it in bf16 VMEM scratch.
    @pl.when(pl.program_id(1) == 0)
    def _():
        x = x_ref[...].astype(jnp.float32)
        # x @ dense_w^T  (dense_w kept in PyTorch (out_features, in_features) layout)
        xw = lax.dot_general(
            x_ref[...].astype(wd_ref.dtype), wd_ref[...],
            dimension_numbers=(((1,), (1,)), ((), ())),
            preferred_element_type=jnp.float32)
        h = _gelu_exact(xw + bd_ref[...]) + x            # GELU + residual (f32 residual)
        # Two-pass LayerNorm: subtract mean first, then mean of squares (stable).
        mean = jnp.mean(h, axis=-1, keepdims=True)
        hc = h - mean
        var = jnp.mean(hc * hc, axis=-1, keepdims=True)
        hn = hc * lax.rsqrt(var + 1e-12)
        h_scr[...] = (hn * g_ref[...] + b_ref[...]).astype(h_scr.dtype)

    # Decoder projection for this (m, vocab) tile:  h @ dec_w^T + b  (bf16 MXU, f32 acc).
    logits = lax.dot_general(
        h_scr[...], wdec_ref[...],
        dimension_numbers=(((1,), (1,)), ((), ())),
        preferred_element_type=jnp.float32)
    o_ref[...] = (logits + bdec_ref[...]).astype(o_ref.dtype)


def mlm_head(hidden_states, params, *, tm=1024, tv=1024,
             matmul_dtype=jnp.bfloat16, out_dtype=jnp.bfloat16):
    """ForMLMTransformHead.forward as one fused Pallas kernel.

    hidden_states: (src_len, batch, embedding_size)
    returns:       (src_len, batch, vocab_size) in `out_dtype`
                   (use out_dtype=jnp.float32 for exact PyTorch-f32 logits).
    """
    S, B, E = hidden_states.shape
    V, E2 = params["dec_w"].shape
    assert E2 == E
    M = S * B

    x2 = hidden_states.reshape(M, E)
    # NOTE: no .T copies — weights are consumed in their native row-major layouts.
    # In production, store these weights in bf16 (and pre-padded) so the casts/pads
    # below are no-ops.
    wd = params["dense_w"].astype(matmul_dtype)            # (E, E)  (out, in)
    bd = params["dense_b"].reshape(1, E).astype(jnp.float32)
    g = params["ln_g"].reshape(1, E).astype(jnp.float32)
    b = params["ln_b"].reshape(1, E).astype(jnp.float32)
    wdec = params["dec_w"].astype(matmul_dtype)            # (V, E)
    bdec = params["dec_b"].astype(jnp.float32)             # (V,)

    # ---- Row (M) tile: big for arithmetic intensity, but >=2 tiles when M allows so
    # v7x's two TensorCores both get work on the "parallel" axis. ----
    if M < 2 * _MIN_ROW_TILE:
        tm_eff = M                                          # single full-extent block
    else:
        tm_eff = min(_round_up(tm, 8), _round_up(pl.cdiv(M, 2), 8))

    # ---- Vocab (V) tile + padding so every vocab tile is full and lane-aligned. ----
    tv_req = max(128, (tv // 128) * 128)
    tv_eff = _round_up(V, 128) if V <= tv_req else tv_req
    V_pad = _round_up(V, tv_eff)
    if V_pad != V:
        wdec = jnp.pad(wdec, ((0, V_pad - V), (0, 0)))
        bdec = jnp.pad(bdec, (0, V_pad - V))
    bdec = bdec.reshape(1, V_pad)

    grid_m = pl.cdiv(M, tm_eff)
    grid_v = V_pad // tv_eff
    grid = (grid_m, grid_v)

    x_it = jnp.dtype(x2.dtype).itemsize
    w_it = jnp.dtype(matmul_dtype).itemsize
    out_it = jnp.dtype(out_dtype).itemsize

    # ---- Explicit VMEM budget: double-buffered pipeline blocks + scratch, 2x headroom,
    # floored at 32 MiB (helps v5e's 16 MiB scoped default) and capped at 64 MiB
    # (v7x physical VMEM per TensorCore). ----
    footprint = (2 * tm_eff * E * x_it            # hidden-row tile
                 + 2 * E * E * w_it               # dense weight (constant block)
                 + 2 * tv_eff * E * w_it          # decoder weight tile
                 + 2 * tm_eff * tv_eff * out_it   # logits tile
                 + tm_eff * E * w_it              # h scratch
                 + 2 * (3 * E + tv_eff) * 4)      # biases / LN params
    vmem_limit = int(min(max(2 * footprint, 32 * 1024 * 1024), 64 * 1024 * 1024))

    # Cost estimate including decoder-weight re-streaming (once per M tile).
    cost = pl.CostEstimate(
        flops=int(2 * M * E * E + 2 * M * E * V_pad),
        transcendentals=int(M * E),
        bytes_accessed=int(M * E * x_it                     # hidden states in
                           + E * E * w_it                   # dense weight (once)
                           + grid_m * V_pad * E * w_it      # decoder weight per M tile
                           + grid_m * V_pad * 4             # decoder bias per M tile
                           + 3 * E * 4                      # dense bias / LN params
                           + M * V_pad * out_it),           # logits out
    )

    out = pl.pallas_call(
        mlm_head_kernel,
        out_shape=jax.ShapeDtypeStruct((M, V_pad), out_dtype),
        grid_spec=pltpu.PrefetchScalarGridSpec(
            num_scalar_prefetch=0,
            grid=grid,
            in_specs=[
                pl.BlockSpec((tm_eff, E), lambda i, j: (i, 0)),   # hidden rows
                pl.BlockSpec((E, E), lambda i, j: (0, 0)),        # dense weight (out,in)
                pl.BlockSpec((1, E), lambda i, j: (0, 0)),        # dense bias
                pl.BlockSpec((1, E), lambda i, j: (0, 0)),        # LN gamma
                pl.BlockSpec((1, E), lambda i, j: (0, 0)),        # LN beta
                pl.BlockSpec((tv_eff, E), lambda i, j: (j, 0)),   # decoder weight tile (V-major)
                pl.BlockSpec((1, tv_eff), lambda i, j: (0, j)),   # decoder bias tile
            ],
            out_specs=pl.BlockSpec((tm_eff, tv_eff), lambda i, j: (i, j)),
            scratch_shapes=[pltpu.VMEM((tm_eff, E), matmul_dtype)],
        ),
        compiler_params=pltpu.CompilerParams(
            # M-tiles are independent (megacore-shardable on v7x); the vocab axis
            # carries h_scr and MUST stay "arbitrary".
            dimension_semantics=("parallel", "arbitrary"),
            vmem_limit_bytes=vmem_limit),
        cost_estimate=cost,
    )(x2, wd, bd, g, b, wdec, bdec)

    if V_pad != V:
        out = out[:, :V]
    return out.reshape(S, B, V)


def for_mlm_model(input_ids, params, *, out_dtype=jnp.bfloat16):
    """ForMLMModel.forward (no masked_lm_labels branch): returns MLM logits."""
    # TODO(synk): EncoderModel (the full BERT encoder stack) is not defined in the
    # reference source; stand-in is a token-embedding lookup producing
    # sequence_output of shape [src_len, batch, embedding_size].
    sequence_output = params["tok_emb"][input_ids]          # (S, B, E)
    return mlm_head(sequence_output, params, out_dtype=out_dtype)


def _reference(hidden_states, params):
    """Plain-JAX f32 reference for correctness check."""
    x = hidden_states.astype(jnp.float32)
    h = x @ params["dense_w"].astype(jnp.float32).T + params["dense_b"]
    h = 0.5 * h * (1.0 + lax.erf(h / jnp.sqrt(2.0)))
    h = h + x
    mean = jnp.mean(h, axis=-1, keepdims=True)
    var = jnp.mean((h - mean) ** 2, axis=-1, keepdims=True)
    h = (h - mean) / jnp.sqrt(var + 1e-12)
    h = h * params["ln_g"] + params["ln_b"]
    return h @ params["dec_w"].astype(jnp.float32).T + params["dec_b"]


def init_params(key, *, vocab_size, embedding_size):
    ks = jax.random.split(key, 4)
    scale = 0.02
    return {
        "tok_emb": scale * jax.random.normal(ks[0], (vocab_size, embedding_size), jnp.float32),
        "dense_w": scale * jax.random.normal(ks[1], (embedding_size, embedding_size), jnp.float32),
        "dense_b": jnp.zeros((embedding_size,), jnp.float32),
        "ln_g": jnp.ones((embedding_size,), jnp.float32),
        "ln_b": jnp.zeros((embedding_size,), jnp.float32),
        "dec_w": scale * jax.random.normal(ks[2], (vocab_size, embedding_size), jnp.float32),
        "dec_b": jnp.zeros((vocab_size,), jnp.float32),
    }


if __name__ == "__main__":
    key = jax.random.PRNGKey(0)

    # --- Test 1: tiny end-to-end ForMLMModel path, f32 logits (exact PyTorch semantics),
    #     single tile in both grid axes ---
    SRC_LEN, BATCH, EMB, VOCAB = 8, 2, 32, 512
    k_param, k_ids, k_rest = jax.random.split(key, 3)
    params = init_params(k_param, vocab_size=VOCAB, embedding_size=EMB)
    input_ids = jax.random.randint(k_ids, (SRC_LEN, BATCH), 1, VOCAB, dtype=jnp.int32)

    logits = jax.block_until_ready(for_mlm_model(input_ids, params, out_dtype=jnp.float32))
    seq_out = params["tok_emb"][input_ids]
    ref = jax.block_until_ready(_reference(seq_out, params))
    assert logits.shape == (SRC_LEN, BATCH, VOCAB)
    # bf16 matmul operands with f32 accumulation vs. a pure-f32 reference.
    assert jnp.allclose(logits, ref, atol=1e-2, rtol=1e-2), "mismatch vs reference (tiny)"

    # --- Test 2: larger shapes exercising the perf path: multi-tile M ("parallel",
    #     >=2 row tiles), multi-tile padded vocab (2560 -> 3072 with tv=1024),
    #     bf16 logits, per-M-tile transform caching ---
    S2, B2, E2, V2 = 64, 8, 128, 2560
    k_p2, k_h2 = jax.random.split(k_rest)
    params2 = init_params(k_p2, vocab_size=V2, embedding_size=E2)
    hidden2 = 0.02 * jax.random.normal(k_h2, (S2, B2, E2), jnp.float32)

    logits2 = jax.block_until_ready(mlm_head(hidden2, params2))   # defaults: tm=tv=1024, bf16 out
    ref2 = jax.block_until_ready(_reference(hidden2, params2))
    assert logits2.shape == (S2, B2, V2)
    assert logits2.dtype == jnp.bfloat16
    assert jnp.allclose(logits2.astype(jnp.float32), ref2, atol=2e-2, rtol=2e-2), \
        "mismatch vs reference (tiled/padded, bf16 logits)"

    print("KERNEL_OK")
</pallas_src>

<mosaic_0001>
module attributes {stable_mosaic.version = 11 : i64} {
  func.func @mlm_head_kernel(%arg0: i32, %arg1: i32, %arg2: memref<16x32xf32, #tpu.memory_space<vmem>>, %arg3: memref<32x32xbf16, #tpu.memory_space<vmem>>, %arg4: memref<1x32xf32, #tpu.memory_space<vmem>>, %arg5: memref<1x32xf32, #tpu.memory_space<vmem>>, %arg6: memref<1x32xf32, #tpu.memory_space<vmem>>, %arg7: memref<512x32xbf16, #tpu.memory_space<vmem>>, %arg8: memref<1x512xf32, #tpu.memory_space<vmem>>, %arg9: memref<16x512xf32, #tpu.memory_space<vmem>>, %arg10: memref<16x32xbf16, #tpu.memory_space<vmem>>) attributes {dimension_semantics = [#tpu.dimension_semantics<parallel>, #tpu.dimension_semantics<arbitrary>], iteration_bounds = array<i64: 1, 1>, scalar_prefetch = 0 : i64, scratch_operands = 1 : i64, tpu.core_type = #tpu.core_type<tc>, window_params = [{transform_indices = @transform_0, window_bounds = array<i64: 16, 32>}, {pipeline_mode = #tpu.pipeline_mode<synchronous>, transform_indices = @transform_1, window_bounds = array<i64: 32, 32>}, {pipeline_mode = #tpu.pipeline_mode<synchronous>, transform_indices = @transform_2, window_bounds = array<i64: 1, 32>}, {pipeline_mode = #tpu.pipeline_mode<synchronous>, transform_indices = @transform_3, window_bounds = array<i64: 1, 32>}, {pipeline_mode = #tpu.pipeline_mode<synchronous>, transform_indices = @transform_4, window_bounds = array<i64: 1, 32>}, {transform_indices = @transform_5, window_bounds = array<i64: 512, 32>}, {transform_indices = @transform_6, window_bounds = array<i64: 1, 512>}, {transform_indices = @transform_7, window_bounds = array<i64: 16, 512>}]} {
    %c0_i32 = arith.constant 0 : i32
    %0 = arith.cmpi eq, %arg1, %c0_i32 : i32
    %1 = arith.extui %0 : i1 to i32
    %c0_i32_0 = arith.constant 0 : i32
    %2 = arith.cmpi ne, %1, %c0_i32_0 : i32
    scf.if %2 {
      %c0_8 = arith.constant 0 : index
      %c0_9 = arith.constant 0 : index
      %10 = vector.load %arg2[%c0_8, %c0_9] : memref<16x32xf32, #tpu.memory_space<vmem>>, vector<16x32xf32>
      %c0_10 = arith.constant 0 : index
      %c0_11 = arith.constant 0 : index
      %11 = vector.load %arg2[%c0_10, %c0_11] : memref<16x32xf32, #tpu.memory_space<vmem>>, vector<16x32xf32>
      %12 = arith.truncf %11 : vector<16x32xf32> to vector<16x32xbf16>
      %c0_12 = arith.constant 0 : index
      %c0_13 = arith.constant 0 : index
      %13 = vector.load %arg3[%c0_12, %c0_13] : memref<32x32xbf16, #tpu.memory_space<vmem>>, vector<32x32xbf16>
      %cst_14 = arith.constant dense<0.000000e+00> : vector<16x32xf32>
      %14 = tpu.matmul %12, %13, %cst_14 {dimension_numbers = #tpu.dot_dimension_numbers<[1], [1], [0], [0], [0, 0, 1, 0], [], []>} : vector<16x32xbf16>, vector<32x32xbf16>, vector<16x32xf32> -> vector<16x32xf32>
      %c0_15 = arith.constant 0 : index
      %c0_16 = arith.constant 0 : index
      %15 = vector.load %arg4[%c0_15, %c0_16] : memref<1x32xf32, #tpu.memory_space<vmem>>, vector<1x32xf32>
      %16 = vector.broadcast %15 : vector<1x32xf32> to vector<16x32xf32>
      %17 = arith.addf %14, %16 : vector<16x32xf32>
      %cst_17 = arith.constant 5.000000e-01 : f32
      %18 = vector.broadcast %cst_17 : f32 to vector<16x32xf32>
      %19 = arith.mulf %18, %17 : vector<16x32xf32>
      %cst_18 = arith.constant 0.707106769 : f32
      %20 = vector.broadcast %cst_18 : f32 to vector<16x32xf32>
      %21 = arith.mulf %17, %20 : vector<16x32xf32>
      %22 = math.erf %21 : vector<16x32xf32>
      %cst_19 = arith.constant 1.000000e+00 : f32
      %23 = vector.broadcast %cst_19 : f32 to vector<16x32xf32>
      %24 = arith.addf %23, %22 : vector<16x32xf32>
      %25 = arith.mulf %19, %24 : vector<16x32xf32>
      %26 = arith.addf %25, %10 : vector<16x32xf32>
      %cst_20 = arith.constant dense<0.000000e+00> : vector<16xf32>
      %27 = vector.multi_reduction <add>, %26, %cst_20 [1] : vector<16x32xf32> to vector<16xf32>
      %28 = vector.shape_cast %27 : vector<16xf32> to vector<16x1xf32>
      %cst_21 = arith.constant 3.200000e+01 : f32
      %29 = vector.broadcast %cst_21 : f32 to vector<16x1xf32>
      %30 = arith.divf %28, %29 : vector<16x1xf32>
      %31 = vector.broadcast %30 : vector<16x1xf32> to vector<16x32xf32>
      %32 = arith.subf %26, %31 : vector<16x32xf32>
      %33 = arith.mulf %32, %32 : vector<16x32xf32>
      %cst_22 = arith.constant dense<0.000000e+00> : vector<16xf32>
      %34 = vector.multi_reduction <add>, %33, %cst_22 [1] : vector<16x32xf32> to vector<16xf32>
      %35 = vector.shape_cast %34 : vector<16xf32> to vector<16x1xf32>
      %cst_23 = arith.constant 3.200000e+01 : f32
      %36 = vector.broadcast %cst_23 : f32 to vector<16x1xf32>
      %37 = arith.divf %35, %36 : vector<16x1xf32>
      %cst_24 = arith.constant 9.99999996E-13 : f32
      %38 = vector.broadcast %cst_24 : f32 to vector<16x1xf32>
      %39 = arith.addf %37, %38 : vector<16x1xf32>
      %40 = math.rsqrt %39 : vector<16x1xf32>
      %41 = vector.broadcast %40 : vector<16x1xf32> to vector<16x32xf32>
      %42 = arith.mulf %32, %41 : vector<16x32xf32>
      %c0_25 = arith.constant 0 : index
      %c0_26 = arith.constant 0 : index
      %43 = vector.load %arg5[%c0_25, %c0_26] : memref<1x32xf32, #tpu.memory_space<vmem>>, vector<1x32xf32>
      %44 = vector.broadcast %43 : vector<1x32xf32> to vector<16x32xf32>
      %45 = arith.mulf %42, %44 : vector<16x32xf32>
      %c0_27 = arith.constant 0 : index
      %c0_28 = arith.constant 0 : index
      %46 = vector.load %arg6[%c0_27, %c0_28] : memref<1x32xf32, #tpu.memory_space<vmem>>, vector<1x32xf32>
      %47 = vector.broadcast %46 : vector<1x32xf32> to vector<16x32xf32>
      %48 = arith.addf %45, %47 : vector<16x32xf32>
      %49 = arith.truncf %48 : vector<16x32xf32> to vector<16x32xbf16>
      %c0_29 = arith.constant 0 : index
      %c0_30 = arith.constant 0 : index
      %50 = vector.load %arg10[%c0_29, %c0_30] : memref<16x32xbf16, #tpu.memory_space<vmem>>, vector<16x32xbf16>
      tpu.vector_store %arg10[%c0_29, %c0_30], %49 {strides = array<i32>} : memref<16x32xbf16, #tpu.memory_space<vmem>>, vector<16x32xbf16>,
    } else {
    }
    %c0 = arith.constant 0 : index
    %c0_1 = arith.constant 0 : index
    %3 = vector.load %arg10[%c0, %c0_1] : memref<16x32xbf16, #tpu.memory_space<vmem>>, vector<16x32xbf16>
    %c0_2 = arith.constant 0 : index
    %c0_3 = arith.constant 0 : index
    %4 = vector.load %arg7[%c0_2, %c0_3] : memref<512x32xbf16, #tpu.memory_space<vmem>>, vector<512x32xbf16>
    %cst = arith.constant dense<0.000000e+00> : vector<16x512xf32>
    %5 = tpu.matmul %3, %4, %cst {dimension_numbers = #tpu.dot_dimension_numbers<[1], [1], [0], [0], [0, 0, 1, 0], [], []>} : vector<16x32xbf16>, vector<512x32xbf16>, vector<16x512xf32> -> vector<16x512xf32>
    %c0_4 = arith.constant 0 : index
    %c0_5 = arith.constant 0 : index
    %6 = vector.load %arg8[%c0_4, %c0_5] : memref<1x512xf32, #tpu.memory_space<vmem>>, vector<1x512xf32>
    %7 = vector.broadcast %6 : vector<1x512xf32> to vector<16x512xf32>
    %8 = arith.addf %5, %7 : vector<16x512xf32>
    %c0_6 = arith.constant 0 : index
    %c0_7 = arith.constant 0 : index
    %9 = vector.load %arg9[%c0_6, %c0_7] : memref<16x512xf32, #tpu.memory_space<vmem>>, vector<16x512xf32>
    tpu.vector_store %arg9[%c0_6, %c0_7], %8 {strides = array<i32>} : memref<16x512xf32, #tpu.memory_space<vmem>>, vector<16x512xf32>,
    return
  }
  func.func @transform_0(%arg0: i32, %arg1: i32) -> (i32, i32) {
    %c0_i32 = arith.constant 0 : i32
    %c0_i32_0 = arith.constant 0 : i32
    return %arg0, %c0_i32 : i32, i32
  }
  func.func @transform_1(%arg0: i32, %arg1: i32) -> (i32, i32) {
    %c0_i32 = arith.constant 0 : i32
    %c0_i32_0 = arith.constant 0 : i32
    %c0_i32_1 = arith.constant 0 : i32
    return %c0_i32, %c0_i32_0 : i32, i32
  }
  func.func @transform_2(%arg0: i32, %arg1: i32) -> (i32, i32) {
    %c0_i32 = arith.constant 0 : i32
    %c0_i32_0 = arith.constant 0 : i32
    %c0_i32_1 = arith.constant 0 : i32
    return %c0_i32, %c0_i32_0 : i32, i32
  }
  func.func @transform_3(%arg0: i32, %arg1: i32) -> (i32, i32) {
    %c0_i32 = arith.constant 0 : i32
    %c0_i32_0 = arith.constant 0 : i32
    %c0_i32_1 = arith.constant 0 : i32
    return %c0_i32, %c0_i32_0 : i32, i32
  }
  func.func @transform_4(%arg0: i32, %arg1: i32) -> (i32, i32) {
    %c0_i32 = arith.constant 0 : i32
    %c0_i32_0 = arith.constant 0 : i32
    %c0_i32_1 = arith.constant 0 : i32
    return %c0_i32, %c0_i32_0 : i32, i32
  }
  func.func @transform_5(%arg0: i32, %arg1: i32) -> (i32, i32) {
    %c0_i32 = arith.constant 0 : i32
    %c0_i32_0 = arith.constant 0 : i32
    return %arg1, %c0_i32 : i32, i32
  }
  func.func @transform_6(%arg0: i32, %arg1: i32) -> (i32, i32) {
    %c0_i32 = arith.constant 0 : i32
    %c0_i32_0 = arith.constant 0 : i32
    return %c0_i32, %arg1 : i32, i32
  }
  func.func @transform_7(%arg0: i32, %arg1: i32) -> (i32, i32) {
    %c0_i32 = arith.constant 0 : i32
    return %arg0, %arg1 : i32, i32
  }
}

</mosaic_0001>

<bundles_post_ra>
// kernel: tpu_custom_call.1
= control target key start
LH: loop header
LB: loop body
LE: loop exit
PB: predicated region body
PF: predicated region fallthrough
CT: control target
= control target key end

     0   :  { %v797_v1 = vmov 0.0   ;;  %vm56_vm0 = vcmask 261120   ;;  %vm798_vm1 = vmmov 0   ;;  %s1018_s0 = inlined_call_operand.vmem [shape: f32[16,32], index: 0, kind: input, shape index: {}]   ;;  %s1019_s1 = inlined_call_operand.vmem [shape: bf16[32,32], index: 1, kind: input, shape index: {}]   ;;  %s1020_s2 = inlined_call_operand.vmem [shape: f32[1,32], index: 2, kind: input, shape index: {}]   ;;  %s1021_s3 = inlined_call_operand.vmem [shape: f32[1,32], index: 3, kind: input, shape index: {}]   ;;  %s1022_s4 = inlined_call_operand.vmem [shape: f32[1,32], index: 4, kind: input, shape index: {}]   ;;  %s1023_s5 = inlined_call_operand.vmem [shape: bf16[512,32], index: 5, kind: input, shape index: {}]   ;;  %s1024_s6 = inlined_call_operand.vmem [shape: f32[1,512], index: 6, kind: input, shape index: {}]   ;;  %s1025_s7 = inlined_call_operand.hbm [shape: f32[16,512], index: 7, kind: output, shape index: {}]  }
   0x1   :  { %v731_v0 = vld [vmem:[%s1019_s1] sm:$0xff]   ;;  %702 = vmatprep.subr.bf16.mxu0 %v797_v1  ;;  %v732_v2 = vld [vmem:[%s1019_s1 + $0x8] sm:$0xff]   ;;  %706 = vmatprep.mubr.msk.bf16.mxu0 %vm798_vm1, %v797_v1 }
   0x2   :  { %v61_v3 = vsel %vm56_vm0, %v731_v0, 0  ;;  %v64_v4 = vsel %vm56_vm0, %v732_v2, 0  ;;  %v32_v5 = vld [vmem:[%s1018_s0] sm:$0xff]  ;;  %v33_v6 = vld [vmem:[%s1018_s0 + $0x8] sm:$0xff] }
   0x3   :  { %703 = vmatpush3.bf16.xpose.msra.mxu0 %v61_v3  ;;  %v34_v7 = vpack.c.bf16 %v33_v6, %v32_v5 }
   0x4   :  { %704 = vmatprep.subr.bf16.mxu0 %v797_v1 }
   0xb   :  { %705 = vmatpush3.bf16.xpose.msra.mxu0 %v64_v4 }
  0x12   :  { %707 = vmatmul.mubr.msk.bf16.vlgmr.msra.gmra.mrb[0].mxu0 %vm56_vm0, %v34_v7 }
  0x13   :  { %12 = vsyncpa [#allocation4], 0  ;;  %v623_v8 = vld [vmem:[%s1020_s2] ss:$0 sm:$0xff]  ;;  %v737_v33 = vld [vmem:[%s1023_s5 + $0x48] sm:$0xff]   ;;  %s799_s23 = smov [#allocation3]  }
  0x14   :  { %v733_v29 = vld [vmem:[%s1023_s5 + $0x40] sm:$0xff]   ;;  %v738_v34 = vld [vmem:[%s1023_s5 + $0xc8] sm:$0xff]   ;;  %v741_v40 = vld [vmem:[%s1023_s5 + $0x50] sm:$0xff]   ;;  %s612_s24 = sshll.u32 %s799_s23, 4  ;;  %s613_s24 = int_to_ptr.vmem [resolvable:$true] %s612_s24 }
  0x15   :  { %v734_v30 = vld [vmem:[%s1023_s5 + $0xc0] sm:$0xff]   ;;  %710 = vmatprep.subr.msk.bf16.mxu1 %vm56_vm0, %v733_v29  ;;  %v739_v37 = vld [vmem:[%s1023_s5 + $0x8] sm:$0xff]   ;;  %v742_v42 = vld [vmem:[%s1023_s5 + $0xd0] sm:$0xff]   ;;  %p778_p1 = scmp.lt.s32.totalorder %s613_s24, %s613_s24 }
  0x16   :  { %v735_v31 = vld [vmem:[%s1023_s5] sm:$0xff]   ;;  %718 = vmatprep.subr.msk.bf16.mxu0 %vm56_vm0, %v734_v30  ;;  %v740_v38 = vld [vmem:[%s1023_s5 + $0x88] sm:$0xff]   ;;  %v421_v39 = vsel %vm56_vm0, %v739_v37, 0  ;;  %v743_v43 = vld [vmem:[%s1023_s5 + $0x10] sm:$0xff]  }
  0x17   :  { %v736_v32 = vld [vmem:[%s1023_s5 + $0x80] sm:$0xff]   ;;  %v418_v35 = vsel %vm56_vm0, %v735_v31, 0  ;;  %v469_v41 = vsel %vm56_vm0, %v740_v38, 0  ;;  %v744_v44 = vld [vmem:[%s1023_s5 + $0x90] sm:$0xff]   ;;  %v424_v45 = vsel %vm56_vm0, %v743_v43, 0  ;;  %v745_v46 = vld [vmem:[%s1023_s5 + $0x58] sm:$0xff]  }
  0x18   :  { %667 = vmatpush3.bf16.xpose.msra.mxu1 %v418_v35  ;;  %v466_v36 = vsel %vm56_vm0, %v736_v32, 0  ;;  %v472_v47 = vsel %vm56_vm0, %v744_v44, 0  ;;  %v746_v48 = vld [vmem:[%s1023_s5 + $0xd8] sm:$0xff]   ;;  %v749_v63 = vld [vmem:[%s1023_s5 + $0x60] sm:$0xff]   ;;  %v755_v7 = vld [vmem:[%s1023_s5 + $0x28] sm:$0xff]  }
  0x19   :  { %685 = vmatpush3.bf16.xpose.msra.mxu0 %v466_v36  ;;  %711 = vmatprep.subr.msk.bf16.mxu1 %vm56_vm0, %v737_v33  ;;  %v747_v49 = vld [vmem:[%s1023_s5 + $0x18] sm:$0xff]   ;;  %v750_v0 = vld [vmem:[%s1023_s5 + $0xe0] sm:$0xff]  }
  0x1a   :  { %719 = vmatprep.subr.msk.bf16.mxu0 %vm56_vm0, %v738_v34  ;;  %v748_v50 = vld [vmem:[%s1023_s5 + $0x98] sm:$0xff]   ;;  %v427_v51 = vsel %vm56_vm0, %v747_v49, 0  ;;  %v751_v1 = vld [vmem:[%s1023_s5 + $0x20] sm:$0xff]  }
  0x1b   :  { %v475_v52 = vsel %vm56_vm0, %v748_v50, 0  ;;  %v752_v2 = vld [vmem:[%s1023_s5 + $0xa0] sm:$0xff]   ;;  %v430_v3 = vsel %vm56_vm0, %v751_v1, 0 }
  0x1c   :  { %v478_v4 = vsel %vm56_vm0, %v752_v2, 0  ;;  %v627_v31 = vld [vmem:[%s1021_s3] ss:$0 sm:$0xff] }
  0x1d   :  { %v628_v35 = vld [vmem:[%s1022_s4] ss:$0 sm:$0xff] }
  0x20   :  { %669 = vmatpush3.bf16.xpose.msra.mxu1 %v421_v39 }
  0x21   :  { %687 = vmatpush3.bf16.xpose.msra.mxu0 %v469_v41  ;;  %712 = vmatprep.subr.msk.bf16.mxu1 %vm56_vm0, %v741_v40  ;;  %v233_v41 = vlaneseq }
  0x22   :  { %720 = vmatprep.subr.msk.bf16.mxu0 %vm56_vm0, %v742_v42 }
  0x23   :  { %v234_v42 = vshrl.u32 %v233_v41, 7 }
  0x25   :  { %v235_v43 = vsub.s32 0, %v234_v42  ;;  %v243_v44 = vsub.s32 2, %v234_v42 }
  0x28   :  { %671 = vmatpush3.bf16.xpose.msra.mxu1 %v424_v45  ;;  %v231_v45 = vld [vmem:[%s1024_s6] sm:$0xf]  ;;  %s773_s6 = scalar_lea.vmem %s613_s24, 1024 }
  0x29   :  { %689 = vmatpush3.bf16.xpose.msra.mxu0 %v472_v47  ;;  %713 = vmatprep.subr.msk.bf16.mxu1 %vm56_vm0, %v745_v46  ;;  %v239_v46 = vsub.s32 1, %v234_v42  ;;  %v247_v47 = vsub.s32 3, %v234_v42  ;;  %v244_v49 = vrot.slane %v231_v45, %v243_v44  ;;  %p774_p0 = scmp.ne.s32.totalorder %s613_s24, %s773_s6  ;;  %p779_p2 = scmp.lt.s32.totalorder %s773_s6, %s773_s6 }
  0x2a   :  { %721 = vmatprep.subr.msk.bf16.mxu0 %vm56_vm0, %v746_v48  ;;  %v236_v48 = vrot.slane %v231_v45, %v235_v43 }
  0x2b   :  { %v240_v50 = vrot.slane %v231_v45, %v239_v46  ;;  %p780_p3 = por %p779_p2, %p778_p1 }
  0x2d   :  { %p781_p4 = pnand %p780_p3, %p774_p0 }
  0x30   :  { %673 = vmatpush3.bf16.xpose.msra.mxu1 %v427_v51  ;;  %v248_v51 = vrot.slane %v231_v45, %v247_v47 }
  0x31   :  { %691 = vmatpush3.bf16.xpose.msra.mxu0 %v475_v52  ;;  %714 = vmatprep.subr.msk.bf16.mxu1 %vm56_vm0, %v749_v63 }
  0x32   :  { %722 = vmatprep.subr.msk.bf16.mxu0 %vm56_vm0, %v750_v0 }
  0x38   :  { %675 = vmatpush3.bf16.xpose.msra.mxu1 %v430_v3 }
  0x39   :  { %693 = vmatpush3.bf16.xpose.msra.mxu0 %v478_v4 }
  0xe5   :  { %v100_v9 = vpop.f32.mrb[0].mxu0 }
  0xe6   :  { %v101_v10 = vadd.f32 %v623_v8, %v100_v9  ;;  %v708_v11 = vpop.f32.mrb[1].mxu0  ;;  %v433_v9 = vsel %vm56_vm0, %v755_v7, 0 }
  0xe7   :  { %v103_v12 = vpop.f32.mrb[2].mxu0  ;;  %v757_v11 = vld [vmem:[%s1023_s5 + $0x70] sm:$0xff]  }
  0xe8   :  { %v109_v13 = vmul.f32 0.70710677, %v101_v10  ;;  %v104_v14 = vadd.f32 %v623_v8, %v103_v12  ;;  %v709_v15 = vpop.f32.mrb[3].mxu0  ;;  %v107_v18 = vmul.f32 0.5, %v101_v10  ;;  %v756_v8 = vld [vmem:[%s1023_s5 + $0xa8] sm:$0xff]   ;;  %v758_v12 = vld [vmem:[%s1023_s5 + $0xf0] sm:$0xff]  }
  0xe9   :  { %v481_v10 = vsel %vm56_vm0, %v756_v8, 0 }
  0xea   :  { %765 = verf.f32 %v109_v13  ;;  %v110_v16 = vmul.f32 0.70710677, %v104_v14  ;;  %v108_v21 = vmul.f32 0.5, %v104_v14  ;;  %v759_v13 = vld [vmem:[%s1023_s5 + $0x30] sm:$0xff]  }
  0xeb   :  { %v760_v14 = vld [vmem:[%s1023_s5 + $0xb0] sm:$0xff]   ;;  %v436_v15 = vsel %vm56_vm0, %v759_v13, 0 }
  0xec   :  { %767 = verf.f32 %v110_v16  ;;  %v484_v16 = vsel %vm56_vm0, %v760_v14, 0 }
  0xf4   :  { %v766_v17 = vpop.eup %765 }
  0xf5   :  { %v113_v19 = vadd.f32 1.0, %v766_v17  ;;  %v761_v17 = vld [vmem:[%s1023_s5 + $0x78] sm:$0xff]  }
  0xf6   :  { %v768_v20 = vpop.eup %767 }
  0xf7   :  { %v114_v22 = vadd.f32 1.0, %v768_v20  ;;  %v115_v23 = vmul.f32 %v113_v19, %v107_v18  ;;  %v762_v18 = vld [vmem:[%s1023_s5 + $0xf8] sm:$0xff]  }
  0xf8   :  { %v763_v19 = vld [vmem:[%s1023_s5 + $0x38] sm:$0xff]  }
  0xf9   :  { %v117_v24 = vadd.f32 %v115_v23, %v32_v5  ;;  %v116_v25 = vmul.f32 %v114_v22, %v108_v21  ;;  %v753_v5 = vld [vmem:[%s1023_s5 + $0x68] sm:$0xff]   ;;  %v764_v20 = vld [vmem:[%s1023_s5 + $0xb8] sm:$0xff]   ;;  %v439_v21 = vsel %vm56_vm0, %v763_v19, 0 }
  0xfa   :  { %715 = vmatprep.subr.msk.bf16.mxu1 %vm56_vm0, %v753_v5  ;;  %v487_v22 = vsel %vm56_vm0, %v764_v20, 0 }
  0xfb   :  { %v119_v26 = vsel %vm56_vm0, %v117_v24, 0.0  ;;  %v118_v27 = vadd.f32 %v116_v25, %v33_v6  ;;  %v754_v6 = vld [vmem:[%s1023_s5 + $0xe8] sm:$0xff]   ;;  %677 = vmatpush3.bf16.xpose.msra.mxu1 %v433_v9 }
  0xfc   :  { %120 = vadd.xlane.f32.xlu0 %v119_v26  ;;  %723 = vmatprep.subr.msk.bf16.mxu0 %vm56_vm0, %v754_v6 }
  0xfd   :  { %v122_v28 = vsel %vm56_vm0, %v118_v27, 0.0  ;;  %695 = vmatpush3.bf16.xpose.msra.mxu0 %v481_v10  ;;  %716 = vmatprep.subr.msk.bf16.mxu1 %vm56_vm0, %v757_v11 }
  0xfe   :  { %724 = vmatprep.subr.msk.bf16.mxu0 %vm56_vm0, %v758_v12 }
 0x100   :  { %123 = vadd.xlane.f32.xlu0 %v122_v28 }
 0x103   :  { %679 = vmatpush3.bf16.xpose.msra.mxu1 %v436_v15 }
 0x104   :  { %717 = vmatprep.subr.msk.bf16.mxu1 %vm56_vm0, %v761_v17 }
 0x105   :  { %697 = vmatpush3.bf16.xpose.msra.mxu0 %v484_v16 }
 0x106   :  { %725 = vmatprep.subr.msk.bf16.mxu0 %vm56_vm0, %v762_v18 }
 0x10b   :  { %681 = vmatpush3.bf16.xpose.msra.mxu1 %v439_v21 }
 0x10d   :  { %699 = vmatpush3.bf16.xpose.msra.mxu0 %v487_v22 }
 0x189   :  { %v121_v53 = vpop.xlane.xlu0 %120 }
 0x18a   :  { %v126_v54 = vmul.f32 0.03125, %v121_v53 }
 0x18c   :  { %v128_v55 = vsub.f32 %v117_v24, %v126_v54 }
 0x18d   :  { %v124_v56 = vpop.xlane.xlu0 %123 }
 0x18e   :  { %v127_v57 = vmul.f32 0.03125, %v124_v56  ;;  %v130_v58 = vmul.f32 %v128_v55, %v128_v55 }
 0x190   :  { %v129_v59 = vsub.f32 %v118_v27, %v127_v57  ;;  %v132_v60 = vsel %vm56_vm0, %v130_v58, 0.0 }
 0x191   :  { %133 = vadd.xlane.f32.xlu1 %v132_v60 }
 0x192   :  { %v131_v61 = vmul.f32 %v129_v59, %v129_v59 }
 0x194   :  { %v135_v62 = vsel %vm56_vm0, %v131_v61, 0.0 }
 0x195   :  { %136 = vadd.xlane.f32.xlu1 %v135_v62 }
 0x21e   :  { %v134_v23 = vpop.xlane.xlu1 %133 }
 0x21f   :  { %v138_v24 = vmul.f32 0.03125, %v134_v23 }
 0x221   :  { %v140_v25 = vadd.f32 1e-12, %v138_v24 }
 0x222   :  { %v137_v26 = vpop.xlane.xlu1 %136 }
 0x223   :  { %769 = vrsqrt.f32 %v140_v25  ;;  %v139_v27 = vmul.f32 0.03125, %v137_v26 }
 0x225   :  { %v141_v28 = vadd.f32 1e-12, %v139_v27 }
 0x227   :  { %771 = vrsqrt.f32 %v141_v28 }
 0x22d   :  { %v770_v29 = vpop.eup %769 }
 0x22e   :  { %v144_v30 = vmul.f32 %v770_v29, %v128_v55 }
 0x230   :  { %v153_v33 = vmul.f32 %v627_v31, %v144_v30 }
 0x231   :  { %v772_v32 = vpop.eup %771 }
 0x232   :  { %v145_v34 = vmul.f32 %v772_v32, %v129_v59  ;;  %v162_v37 = vadd.f32 %v628_v35, %v153_v33 }
 0x234   :  { %v154_v36 = vmul.f32 %v627_v31, %v145_v34 }
 0x236   :  { %v163_v38 = vadd.f32 %v628_v35, %v154_v36 }
 0x238   :  { %v164_v39 = vpack.c.bf16 %v163_v38, %v162_v37 }
 0x23a   :  { %165 = vst.msk [vmem:[#allocation2] sm:$0xff] %vm56_vm0, %v164_v39 }
 0x241   :  { %v166_v40 = vld [vmem:[#allocation2] sm:$0xff] }
 0x242   :  { %682 = vmatprep.mubr.msk.bf16.mxu1 %vm56_vm0, %v166_v40  ;;  %700 = vmatprep.mubr.msk.bf16.mxu0 %vm56_vm0, %v166_v40 }
 0x243   :  { %683 = vmatmul.mubr.msk.bf16.vlgmr.msra.gmra.mrb[0].mxu1 %vm56_vm0, %v166_v40  ;;  %701 = vmatmul.mubr.msk.bf16.vlgmr.msra.gmra.mrb[4].mxu0 %vm56_vm0, %v166_v40 }
 0x316   :  { %v547_v52 = vpop.f32.mrb[0].mxu1  ;;  %v590_v53 = vpop.f32.mrb[4].mxu0 }
 0x317   :  { %v548_v54 = vadd.f32 %v547_v52, %v236_v48  ;;  %v591_v55 = vadd.f32 %v590_v53, %v244_v49  ;;  %v549_v56 = vpop.f32.mrb[1].mxu1  ;;  %v592_v57 = vpop.f32.mrb[5].mxu0 }
 0x318   :  { %v550_v58 = vadd.f32 %v549_v56, %v240_v50  ;;  %v593_v59 = vadd.f32 %v592_v57, %v248_v51  ;;  %v551_v60 = vpop.f32.mrb[2].mxu1  ;;  %v594_v61 = vpop.f32.mrb[6].mxu0 }
 0x319   :  { %599 = vst [vmem:[#allocation3] sm:$0xff] %v548_v54  ;;  %601 = vst [vmem:[#allocation3 + $0x10] sm:$0xff] %v591_v55  ;;  %v552_v62 = vadd.f32 %v551_v60, %v236_v48  ;;  %v595_v63 = vadd.f32 %v594_v61, %v244_v49  ;;  %v553_v0 = vpop.f32.mrb[3].mxu1  ;;  %v596_v1 = vpop.f32.mrb[7].mxu0 }
 0x31a   :  { %600 = vst [vmem:[#allocation3 + $0x8] sm:$0xff] %v550_v58  ;;  %602 = vst [vmem:[#allocation3 + $0x18] sm:$0xff] %v593_v59  ;;  %v554_v2 = vadd.f32 %v553_v0, %v240_v50  ;;  %v597_v3 = vadd.f32 %v596_v1, %v248_v51 }
 0x31b   :  { %603 = vst [vmem:[#allocation3 + $0x20] sm:$0xff] %v552_v62  ;;  %605 = vst [vmem:[#allocation3 + $0x30] sm:$0xff] %v595_v63 }
 0x31c   :  { %604 = vst [vmem:[#allocation3 + $0x28] sm:$0xff] %v554_v2  ;;  %606 = vst [vmem:[#allocation3 + $0x38] sm:$0xff] %v597_v3 }
 0x31d   :  { %784 = shalt.err (!%p781_p4)
}
 0x31e   :  { %s785_s27 = scalar_lea.hbm %s1025_s7, 1024 }
 0x31f   :  { %p786_p5 = scmp.ne.s32.totalorder %s1025_s7, %s785_s27  ;;  %p789_p6 = scmp.lt.u32.totalorder %s785_s27, %s1025_s7 }
 0x321   :  { %p791_p7 = pnand %p789_p6, %p786_p5 }
 0x323   :  { %794 = shalt.err (!%p791_p7)
}
 0x324   :  { %s800_s1 = smov 512   ;;  %s801_s9 = smov 32  }
 0x325   :  { %618 = dma.vmem_to_hbm [thread:$0]  %s613_s24, 1024, %s1025_s7, [#allocation4], %s800_s1, %s800_s1, %s801_s9  }
 0x326   :  { %795 = dma.done.wait [#allocation4], 1024  }
 0x327   :  { %796 = vsyncadd [#allocation4], 4294966272 }
 0x328   :  { %622 = vsyncpa [#allocation4], 1 }

</bundles_post_ra>
